<compile_context>
chip_gen: v7x
topology: tpu7x:2x2x1
jax: 0.10.0
libtpu: 0.0.40
codegen_flags: <defaults>
</compile_context>

<pallas_src>
import math
from functools import partial

import jax
import jax.numpy as jnp
import numpy as np
from jax.experimental import pallas as pl
from jax.experimental.pallas import tpu as pltpu

_TARGET_TILE_BYTES = 4 << 20      # ~4 MiB per tile buffer (roofline knee on all gens)
_MAX_LANE_ROW_BYTES = 1 << 20     # allow lcm-repacked rows up to 1 MiB wide


def _layer_scale_kernel(x_ref, gamma_ref, out_ref):
    # (tr, L) * (1, L) broadcast multiply — one VPU pass, lane-dense store.
    out_ref[...] = (x_ref[...] * gamma_ref[...]).astype(out_ref.dtype)


def _lane_plan(x_shape, elem_bytes):
    """Static plan: view x as (rows, lane) with a lane-dense (mult-of-128) last axis."""
    C = x_shape[-1]
    total = math.prod(x_shape)
    rows = total // C
    if C % 128 == 0:
        return rows, C, 1
    lane = (C * 128) // math.gcd(C, 128)          # lcm(C, 128)
    if total % lane == 0 and lane * elem_bytes <= _MAX_LANE_ROW_BYTES:
        return total // lane, lane, lane // C     # fully lane-dense view
    # Fallback: keep (rows, C); last dim equals the full array dim (masked stores).
    return rows, C, 1


def _pick_row_tile(rows, lane, elem_bytes):
    """Row tile near the ~4 MiB knee; multiple of 8; >=2 grid steps when rows > 8."""
    if rows <= 8:
        return rows
    row_bytes = lane * elem_bytes
    tr = max(8, (_TARGET_TILE_BYTES // row_bytes) // 8 * 8)
    tr = min(tr, ((rows + 7) // 8) * 8)
    if pl.cdiv(rows, tr) < 2:                      # keep both v7x TCs busy
        tr = max(8, (((rows + 1) // 2 + 7) // 8) * 8)
    return tr


@partial(jax.jit, static_argnames=("inplace",))
def layer_scale(x, gamma, *, inplace=False):
    """Pallas TPU LayerScale: y = x * gamma (gamma broadcast over last axis)."""
    in_b = jnp.dtype(x.dtype).itemsize
    g_b = jnp.dtype(gamma.dtype).itemsize
    out_dtype = x.dtype                       # keep x's dtype (matches mul_; halves bf16 store traffic)
    out_b = jnp.dtype(out_dtype).itemsize
    elem_b = max(in_b, out_b, g_b)

    rows, lane, reps = _lane_plan(x.shape, elem_b)
    C = x.shape[-1]

    x2 = x.reshape(rows, lane)
    g2 = gamma.reshape(1, C)
    if reps > 1:
        g2 = jnp.tile(g2, (1, reps))          # fused into this jit; cached per param shape

    tr = _pick_row_tile(rows, lane, max(in_b, out_b))
    grid = (pl.cdiv(rows, tr),)

    # Double-buffered x tile + double-buffered out tile + gamma, +30% headroom.
    ws = 2 * tr * lane * in_b + 2 * tr * lane * out_b + 2 * lane * g_b
    vmem_limit = min(max(int(ws * 1.3) + (1 << 20), 32 << 20), 48 << 20)

    extra = {}
    if inplace:
        # In-place variant (x.mul_(gamma)): reuse x's HBM buffer for the output.
        extra["input_output_aliases"] = {0: 0}

    out = pl.pallas_call(
        _layer_scale_kernel,
        out_shape=jax.ShapeDtypeStruct((rows, lane), out_dtype),
        grid=grid,
        in_specs=[
            pl.BlockSpec((tr, lane), lambda i: (i, 0)),   # x tile (lane-dense)
            pl.BlockSpec((1, lane), lambda i: (0, 0)),    # gamma (resident, tiny)
        ],
        out_specs=pl.BlockSpec((tr, lane), lambda i: (i, 0)),
        compiler_params=pltpu.CompilerParams(
            dimension_semantics=("parallel",),            # shard rows over v7x's 2 TCs
            vmem_limit_bytes=vmem_limit,
        ),
        **extra,
    )(x2, g2)
    return out.reshape(x.shape)


def reference(x, gamma):
    return x * gamma  # broadcast over the last axis, like PyTorch


if __name__ == "__main__":
    key = jax.random.PRNGKey(0)
    k1, k2, k3 = jax.random.split(key, 3)

    # Case 1: dim not a multiple of 128 -> lcm repack to 128-wide lanes.
    B, N, C = 2, 8, 32
    x = jax.random.normal(k1, (B, N, C), jnp.float32)
    gamma = 1e-5 + 0.1 * jax.random.normal(k2, (C,), jnp.float32)
    out = jax.block_until_ready(layer_scale(x, gamma))
    np.testing.assert_allclose(np.asarray(out), np.asarray(reference(x, gamma)),
                               rtol=1e-6, atol=1e-6)

    # Case 2: dim a multiple of 128, gamma at the module's init (1e-5 * ones).
    B2, N2, C2 = 2, 4, 128
    x2 = jax.random.normal(k3, (B2, N2, C2), jnp.float32)
    gamma2 = 1e-5 * jnp.ones((C2,), jnp.float32)
    out2 = jax.block_until_ready(layer_scale(x2, gamma2))
    np.testing.assert_allclose(np.asarray(out2), np.asarray(reference(x2, gamma2)),
                               rtol=1e-6, atol=1e-6)

    # Case 3: inplace=True path (input_output_aliases); same math, x's dtype kept.
    out3 = jax.block_until_ready(layer_scale(x2, gamma2, inplace=True))
    np.testing.assert_allclose(np.asarray(out3), np.asarray(reference(x2, gamma2)),
                               rtol=1e-6, atol=1e-6)

    print("KERNEL_OK")
</pallas_src>

<mosaic_0001>
module attributes {stable_mosaic.version = 11 : i64} {
  func.func @_layer_scale_kernel(%arg0: i32, %arg1: memref<4x128xf32, #tpu.memory_space<vmem>>, %arg2: memref<1x128xf32, #tpu.memory_space<vmem>>, %arg3: memref<4x128xf32, #tpu.memory_space<vmem>>) attributes {dimension_semantics = [#tpu.dimension_semantics<parallel>], iteration_bounds = array<i64: 1>, scalar_prefetch = 0 : i64, scratch_operands = 0 : i64, tpu.core_type = #tpu.core_type<tc>, window_params = [{transform_indices = @transform_0, window_bounds = array<i64: 4, 128>}, {pipeline_mode = #tpu.pipeline_mode<synchronous>, transform_indices = @transform_1, window_bounds = array<i64: 1, 128>}, {transform_indices = @transform_2, window_bounds = array<i64: 4, 128>}]} {
    %c0 = arith.constant 0 : index
    %c0_0 = arith.constant 0 : index
    %0 = vector.load %arg1[%c0, %c0_0] : memref<4x128xf32, #tpu.memory_space<vmem>>, vector<4x128xf32>
    %c0_1 = arith.constant 0 : index
    %c0_2 = arith.constant 0 : index
    %1 = vector.load %arg2[%c0_1, %c0_2] : memref<1x128xf32, #tpu.memory_space<vmem>>, vector<1x128xf32>
    %2 = vector.broadcast %1 : vector<1x128xf32> to vector<4x128xf32>
    %3 = arith.mulf %0, %2 : vector<4x128xf32>
    %c0_3 = arith.constant 0 : index
    %c0_4 = arith.constant 0 : index
    %4 = vector.load %arg3[%c0_3, %c0_4] : memref<4x128xf32, #tpu.memory_space<vmem>>, vector<4x128xf32>
    tpu.vector_store %arg3[%c0_3, %c0_4], %3 {strides = array<i32>} : memref<4x128xf32, #tpu.memory_space<vmem>>, vector<4x128xf32>,
    return
  }
  func.func @transform_0(%arg0: i32) -> (i32, i32) {
    %c0_i32 = arith.constant 0 : i32
    %c0_i32_0 = arith.constant 0 : i32
    return %arg0, %c0_i32 : i32, i32
  }
  func.func @transform_1(%arg0: i32) -> (i32, i32) {
    %c0_i32 = arith.constant 0 : i32
    %c0_i32_0 = arith.constant 0 : i32
    %c0_i32_1 = arith.constant 0 : i32
    return %c0_i32, %c0_i32_0 : i32, i32
  }
  func.func @transform_2(%arg0: i32) -> (i32, i32) {
    %c0_i32 = arith.constant 0 : i32
    %c0_i32_0 = arith.constant 0 : i32
    return %arg0, %c0_i32 : i32, i32
  }
}

</mosaic_0001>

<bundles_post_ra>
// kernel: layer_scale.1
= control target key start
LH: loop header
LB: loop body
LE: loop exit
PB: predicated region body
PF: predicated region fallthrough
CT: control target
= control target key end

     0   :  { %s50_s0 = inlined_call_operand.vmem [shape: f32[4,128], index: 0, kind: input, shape index: {}]   ;;  %s51_s1 = inlined_call_operand.vmem [shape: f32[1,128], index: 1, kind: input, shape index: {}]   ;;  %s52_s2 = inlined_call_operand.vmem [shape: f32[4,128], index: 2, kind: output, shape index: {}]  }
   0x1   :  { %v11_v0 = vld [vmem:[%s50_s0] sm:$0xf] }
   0x2   :  { %v25_v1 = vld [vmem:[%s51_s1] ss:$0 sm:$0xff] }
   0x3   :  { %v19_v2 = vmul.f32 %v25_v1, %v11_v0 }
   0x5   :  { %20 = vst [vmem:[%s52_s2] sm:$0xf] %v19_v2 }

</bundles_post_ra>
